<compile_context>
chip_gen: v7x
topology: tpu7x:2x2x1
jax: 0.10.0
libtpu: 0.0.40
codegen_flags: <defaults>
</compile_context>

<pallas_src>
import numpy as np
import jax
import jax.numpy as jnp
from jax.experimental import pallas as pl
from jax.experimental.pallas import tpu as pltpu


def _gtconv_kernel(filt_ref, a_ref, out_ref):
    # filt_ref: (C_out, C_in) f32 in SMEM -- softmax(weight) from the wrapper
    # a_ref:    (C_in, R, 128) f32 VMEM tile of the flattened adjacencies
    # out_ref:  (C_out, R, 128) f32 VMEM tile of the mixed adjacencies
    c_in = a_ref.shape[0]
    c_out = out_ref.shape[0]
    # Hoist channel loads: each (R, 128) slab is read from VMEM once.
    a = [a_ref[j] for j in range(c_in)]
    for o in range(c_out):
        acc = filt_ref[o, 0] * a[0]
        for j in range(1, c_in):
            acc = acc + filt_ref[o, j] * a[j]
        out_ref[o] = acc


def _choose_row_tile(rows, c_in, c_out, vmem_budget_bytes=8 * 1024 * 1024):
    """Pick the (8,128)-packed row tile; returns (row_tile, padded_rows)."""
    # double-buffered input + output footprint per grid step, f32
    bytes_per_row = 2 * (c_in + c_out) * 128 * 4
    max_rows = max(1, vmem_budget_bytes // bytes_per_row)
    if rows <= max_rows:
        return rows, rows                      # single grid step, no padding
    r_tile = max(8, (max_rows // 8) * 8)       # multiple of 8 sublanes
    padded_rows = ((rows + r_tile - 1) // r_tile) * r_tile
    return r_tile, padded_rows


def gtconv_forward(weight, A_dense):
    """weight: (C_out, C_in) f32; A_dense: (C_in, N, N) f32.

    Returns (results, filter): results is (C_out, N, N), the dense equivalent
    of the coalesced sparse weighted sums; filter is softmax(weight, axis=1).
    """
    c_out, c_in = weight.shape
    n = A_dense.shape[-1]
    nn = n * n

    # Softmax over the tiny mixing weights lives in the wrapper (perf review).
    filt = jax.nn.softmax(weight.astype(jnp.float32), axis=1)

    # Lane-dense, sublane-packed 3-D view: (C_in, rows, 128).
    rows = (nn + 127) // 128
    lane_pad = rows * 128 - nn
    a_flat = A_dense.reshape(c_in, nn).astype(jnp.float32)
    if lane_pad:
        a_flat = jnp.pad(a_flat, ((0, 0), (0, lane_pad)))
    a3 = a_flat.reshape(c_in, rows, 128)

    r_tile, padded_rows = _choose_row_tile(rows, c_in, c_out)
    if padded_rows != rows:
        a3 = jnp.pad(a3, ((0, 0), (0, padded_rows - rows), (0, 0)))

    out3 = pl.pallas_call(
        _gtconv_kernel,
        out_shape=jax.ShapeDtypeStruct((c_out, padded_rows, 128), jnp.float32),
        grid_spec=pltpu.PrefetchScalarGridSpec(
            num_scalar_prefetch=0,
            grid=(padded_rows // r_tile,),
            in_specs=[
                pl.BlockSpec(memory_space=pltpu.MemorySpace.SMEM),      # filter
                pl.BlockSpec((c_in, r_tile, 128), lambda i: (0, i, 0)),  # A tile
            ],
            out_specs=pl.BlockSpec((c_out, r_tile, 128), lambda i: (0, i, 0)),
        ),
        compiler_params=pltpu.CompilerParams(
            dimension_semantics=("parallel",)),   # independent tiles; megacore on v7x
        cost_estimate=pl.CostEstimate(
            flops=2 * c_out * c_in * nn,
            transcendentals=0,
            bytes_accessed=4 * (c_in + c_out) * nn),
    )(filt, a3)

    out_flat = out3.reshape(c_out, padded_rows * 128)[:, :nn]
    return out_flat.reshape(c_out, n, n), filt


def _make_params(in_channels, out_channels):
    # Matches GTConv.reset_parameters(): weight = 1 / num_edges (constant),
    # bias is None, scale is a fixed non-trainable 0.1 (unused in forward).
    weight = jnp.full((out_channels, in_channels), 1.0 / in_channels,
                      dtype=jnp.float32)
    scale = jnp.array([0.1], dtype=jnp.float32)  # unused in forward
    return weight, scale


def _make_dense_adjacencies(key, in_channels, num_nodes, density=0.25):
    # Deterministic sparse-ish adjacency matrices stored densely.
    keys = jax.random.split(key, 2)
    mask = (jax.random.uniform(keys[0], (in_channels, num_nodes, num_nodes))
            < density).astype(jnp.float32)
    vals = jax.random.uniform(keys[1], (in_channels, num_nodes, num_nodes),
                              dtype=jnp.float32)
    return mask * vals


if __name__ == "__main__":
    in_channels = 4     # number of edge types / input adjacencies
    out_channels = 2
    num_nodes = 16      # N*N = 256 -> a single (4, 2, 128) block / one grid step

    key = jax.random.PRNGKey(0)
    weight, _scale = _make_params(in_channels, out_channels)
    A_dense = _make_dense_adjacencies(key, in_channels, num_nodes)

    results, filt = gtconv_forward(weight, A_dense)
    results = jax.block_until_ready(results)
    filt = jax.block_until_ready(filt)

    # Reference (plain JAX) check of the same semantics.
    filt_ref = jax.nn.softmax(weight, axis=1)
    res_ref = jnp.einsum("oj,jnm->onm", filt_ref, A_dense)
    assert np.allclose(np.asarray(filt), np.asarray(filt_ref), atol=1e-6)
    assert np.allclose(np.asarray(results), np.asarray(res_ref), atol=1e-5)

    # TODO(synk): torch_sparse.coalesce deduplication of COO indices has no
    # direct Pallas equivalent; the dense weighted-sum above is its exact
    # dense-semantics counterpart.
    print("KERNEL_OK")
</pallas_src>

<mosaic_0001>
module attributes {stable_mosaic.version = 11 : i64} {
  func.func @_gtconv_kernel(%arg0: i32, %arg1: memref<2x4xf32, #tpu.memory_space<smem>>, %arg2: memref<4x2x128xf32, #tpu.memory_space<vmem>>, %arg3: memref<2x2x128xf32, #tpu.memory_space<vmem>>) attributes {dimension_semantics = [#tpu.dimension_semantics<parallel>], iteration_bounds = array<i64: 1>, scalar_prefetch = 0 : i64, scratch_operands = 0 : i64, tpu.core_type = #tpu.core_type<tc>, window_params = [{transform_indices = @transform_0, window_bounds = array<i64: 2, 4>}, {transform_indices = @transform_1, window_bounds = array<i64: 4, 2, 128>}, {transform_indices = @transform_2, window_bounds = array<i64: 2, 2, 128>}]} {
    %c0 = arith.constant 0 : index
    %c0_0 = arith.constant 0 : index
    %c0_1 = arith.constant 0 : index
    %0 = vector.load %arg2[%c0, %c0_0, %c0_1] : memref<4x2x128xf32, #tpu.memory_space<vmem>>, vector<1x2x128xf32>
    %1 = vector.shape_cast %0 : vector<1x2x128xf32> to vector<2x128xf32>
    %c1 = arith.constant 1 : index
    %c0_2 = arith.constant 0 : index
    %c0_3 = arith.constant 0 : index
    %2 = vector.load %arg2[%c1, %c0_2, %c0_3] : memref<4x2x128xf32, #tpu.memory_space<vmem>>, vector<1x2x128xf32>
    %3 = vector.shape_cast %2 : vector<1x2x128xf32> to vector<2x128xf32>
    %c2 = arith.constant 2 : index
    %c0_4 = arith.constant 0 : index
    %c0_5 = arith.constant 0 : index
    %4 = vector.load %arg2[%c2, %c0_4, %c0_5] : memref<4x2x128xf32, #tpu.memory_space<vmem>>, vector<1x2x128xf32>
    %5 = vector.shape_cast %4 : vector<1x2x128xf32> to vector<2x128xf32>
    %c3 = arith.constant 3 : index
    %c0_6 = arith.constant 0 : index
    %c0_7 = arith.constant 0 : index
    %6 = vector.load %arg2[%c3, %c0_6, %c0_7] : memref<4x2x128xf32, #tpu.memory_space<vmem>>, vector<1x2x128xf32>
    %7 = vector.shape_cast %6 : vector<1x2x128xf32> to vector<2x128xf32>
    %c0_8 = arith.constant 0 : index
    %c0_9 = arith.constant 0 : index
    %8 = memref.load %arg1[%c0_8, %c0_9] : memref<2x4xf32, #tpu.memory_space<smem>>
    %9 = vector.broadcast %8 : f32 to vector<2x128xf32>
    %10 = arith.mulf %9, %1 : vector<2x128xf32>
    %c0_10 = arith.constant 0 : index
    %c1_11 = arith.constant 1 : index
    %11 = memref.load %arg1[%c0_10, %c1_11] : memref<2x4xf32, #tpu.memory_space<smem>>
    %12 = vector.broadcast %11 : f32 to vector<2x128xf32>
    %13 = arith.mulf %12, %3 : vector<2x128xf32>
    %14 = arith.addf %10, %13 : vector<2x128xf32>
    %c0_12 = arith.constant 0 : index
    %c2_13 = arith.constant 2 : index
    %15 = memref.load %arg1[%c0_12, %c2_13] : memref<2x4xf32, #tpu.memory_space<smem>>
    %16 = vector.broadcast %15 : f32 to vector<2x128xf32>
    %17 = arith.mulf %16, %5 : vector<2x128xf32>
    %18 = arith.addf %14, %17 : vector<2x128xf32>
    %c0_14 = arith.constant 0 : index
    %c3_15 = arith.constant 3 : index
    %19 = memref.load %arg1[%c0_14, %c3_15] : memref<2x4xf32, #tpu.memory_space<smem>>
    %20 = vector.broadcast %19 : f32 to vector<2x128xf32>
    %21 = arith.mulf %20, %7 : vector<2x128xf32>
    %22 = arith.addf %18, %21 : vector<2x128xf32>
    %c0_16 = arith.constant 0 : index
    %c0_17 = arith.constant 0 : index
    %c0_18 = arith.constant 0 : index
    %23 = vector.load %arg3[%c0_16, %c0_17, %c0_18] : memref<2x2x128xf32, #tpu.memory_space<vmem>>, vector<1x2x128xf32>
    %24 = vector.shape_cast %23 : vector<1x2x128xf32> to vector<2x128xf32>
    %25 = vector.shape_cast %22 : vector<2x128xf32> to vector<1x2x128xf32>
    tpu.vector_store %arg3[%c0_16, %c0_17, %c0_18], %25 {strides = array<i32>} : memref<2x2x128xf32, #tpu.memory_space<vmem>>, vector<1x2x128xf32>,
    %c1_19 = arith.constant 1 : index
    %c0_20 = arith.constant 0 : index
    %26 = memref.load %arg1[%c1_19, %c0_20] : memref<2x4xf32, #tpu.memory_space<smem>>
    %27 = vector.broadcast %26 : f32 to vector<2x128xf32>
    %28 = arith.mulf %27, %1 : vector<2x128xf32>
    %c1_21 = arith.constant 1 : index
    %c1_22 = arith.constant 1 : index
    %29 = memref.load %arg1[%c1_21, %c1_22] : memref<2x4xf32, #tpu.memory_space<smem>>
    %30 = vector.broadcast %29 : f32 to vector<2x128xf32>
    %31 = arith.mulf %30, %3 : vector<2x128xf32>
    %32 = arith.addf %28, %31 : vector<2x128xf32>
    %c1_23 = arith.constant 1 : index
    %c2_24 = arith.constant 2 : index
    %33 = memref.load %arg1[%c1_23, %c2_24] : memref<2x4xf32, #tpu.memory_space<smem>>
    %34 = vector.broadcast %33 : f32 to vector<2x128xf32>
    %35 = arith.mulf %34, %5 : vector<2x128xf32>
    %36 = arith.addf %32, %35 : vector<2x128xf32>
    %c1_25 = arith.constant 1 : index
    %c3_26 = arith.constant 3 : index
    %37 = memref.load %arg1[%c1_25, %c3_26] : memref<2x4xf32, #tpu.memory_space<smem>>
    %38 = vector.broadcast %37 : f32 to vector<2x128xf32>
    %39 = arith.mulf %38, %7 : vector<2x128xf32>
    %40 = arith.addf %36, %39 : vector<2x128xf32>
    %c1_27 = arith.constant 1 : index
    %c0_28 = arith.constant 0 : index
    %c0_29 = arith.constant 0 : index
    %41 = vector.load %arg3[%c1_27, %c0_28, %c0_29] : memref<2x2x128xf32, #tpu.memory_space<vmem>>, vector<1x2x128xf32>
    %42 = vector.shape_cast %41 : vector<1x2x128xf32> to vector<2x128xf32>
    %43 = vector.shape_cast %40 : vector<2x128xf32> to vector<1x2x128xf32>
    tpu.vector_store %arg3[%c1_27, %c0_28, %c0_29], %43 {strides = array<i32>} : memref<2x2x128xf32, #tpu.memory_space<vmem>>, vector<1x2x128xf32>,
    return
  }
  func.func @transform_0(%arg0: i32) -> (i32, i32) {
    %c0_i32 = arith.constant 0 : i32
    %c0_i32_0 = arith.constant 0 : i32
    %c0_i32_1 = arith.constant 0 : i32
    return %c0_i32, %c0_i32_0 : i32, i32
  }
  func.func @transform_1(%arg0: i32) -> (i32, i32, i32) {
    %c0_i32 = arith.constant 0 : i32
    %c0_i32_0 = arith.constant 0 : i32
    %c0_i32_1 = arith.constant 0 : i32
    return %c0_i32, %arg0, %c0_i32_0 : i32, i32, i32
  }
  func.func @transform_2(%arg0: i32) -> (i32, i32, i32) {
    %c0_i32 = arith.constant 0 : i32
    %c0_i32_0 = arith.constant 0 : i32
    %c0_i32_1 = arith.constant 0 : i32
    return %c0_i32, %arg0, %c0_i32_0 : i32, i32, i32
  }
}

</mosaic_0001>

<bundles_post_ra>
// kernel: tpu_custom_call.1
= control target key start
LH: loop header
LB: loop body
LE: loop exit
PB: predicated region body
PF: predicated region fallthrough
CT: control target
= control target key end

     0   :  { %7 = vsyncpa [#allocation5], 0  ;;  %s229_s0 = inlined_call_operand.hbm [shape: f32[2,4], index: 0, kind: input, shape index: {}]   ;;  %s230_s1 = inlined_call_operand.hbm [shape: f32[4,2,128], index: 1, kind: input, shape index: {}]   ;;  %s231_s2 = inlined_call_operand.hbm [shape: f32[2,2,128], index: 2, kind: output, shape index: {}]  }
   0x1   :  { %8 = vsyncpa [#allocation3], 0 }
   0x2   :  { %9 = vsyncpa [#allocation4], 0  ;;  %s107_s11 = scalar_lea.hbm %s229_s0, 32 }
   0x3   :  { %p108_p0 = scmp.ne.s32.totalorder %s229_s0, %s107_s11  ;;  %p111_p1 = scmp.lt.u32.totalorder %s107_s11, %s229_s0 }
   0x5   :  { %p113_p2 = pnand %p111_p1, %p108_p0 }
   0x7   :  { %116 = shalt.err (!%p113_p2)
}
   0x8   :  { %s167_s16 = smov [#allocation2]   ;;  %s168_s19 = smov [#allocation6]  }
   0x9   :  { %17 = dma.hbm_to_smem %s229_s0, 32, %s167_s16, [#allocation5]  }
   0xa   :  { %s23_s20 = sshll.u32 %s168_s19, 4  ;;  %s117_s23 = scalar_lea.hbm %s230_s1, 128  ;;  %s24_s20 = int_to_ptr.vmem [resolvable:$true] %s23_s20 }
   0xb   :  { %p118_p3 = scmp.ne.s32.totalorder %s230_s1, %s117_s23  ;;  %p121_p4 = scmp.lt.u32.totalorder %s117_s23, %s230_s1 }
   0xd   :  { %p123_p5 = pnand %p121_p4, %p118_p3 }
   0xf   :  { %126 = shalt.err (!%p123_p5)
}
  0x10   :  { %s127_s28 = scalar_lea.vmem %s24_s20, 128  ;;  %p132_p7 = scmp.lt.s32.totalorder %s24_s20, %s24_s20 }
  0x11   :  { %p128_p6 = scmp.ne.s32.totalorder %s24_s20, %s127_s28  ;;  %p133_p8 = scmp.lt.s32.totalorder %s127_s28, %s127_s28 }
  0x13   :  { %p134_p9 = por %p133_p8, %p132_p7 }
  0x15   :  { %p135_p10 = pnand %p134_p9, %p128_p6 }
  0x17   :  { %138 = shalt.err (!%p135_p10)
}
  0x18   :  { %s169_s0 = smov 32   ;;  %s170_s29 = smov 2  }
  0x19   :  { %29 = dma.hbm_to_vmem [thread:$0]  %s230_s1, 128, %s24_s20, [#allocation3], %s169_s0, %s169_s0, %s170_s29  }
  0x1a   :  { %161 = dma.done.wait [#allocation5], 32  }
  0x1b   :  { %162 = vsyncadd [#allocation5], 4294967264 }
  0x1c   :  { %163 = dma.done.wait [#allocation3], 128  }
  0x1d   :  { %164 = vsyncadd [#allocation3], 4294967168 }
  0x1e   :  { %36 = sfence }
  0x1f   :  { %s44_s4 = sld [smem:[#allocation2]]  ;;  %s95_s5 = sld [smem:[#allocation2 + $0x1]]  ;;  %v37_v0 = vld [vmem:[#allocation6] sm:$0x3]  ;;  %v39_v1 = vld [vmem:[#allocation6 + $0x2] sm:$0x3] }
  0x20   :  { %s96_s6 = sld [smem:[#allocation2 + $0x2]]  ;;  %s97_s7 = sld [smem:[#allocation2 + $0x3]]  ;;  %v41_v2 = vld [vmem:[#allocation6 + $0x4] sm:$0x3]  ;;  %v43_v3 = vld [vmem:[#allocation6 + $0x6] sm:$0x3] }
  0x21   :  { %s98_s8 = sld [smem:[#allocation2 + $0x80]]  ;;  %s99_s9 = sld [smem:[#allocation2 + $0x81]] }
  0x22   :  { %s100_s10 = sld [smem:[#allocation2 + $0x82]]  ;;  %s101_s11 = sld [smem:[#allocation2 + $0x83]] }
  0x23   :  { %s171_s1 = smov [#allocation7]  }
  0x24   :  { %s82_s12 = sshll.u32 %s171_s1, 4  ;;  %s83_s12 = int_to_ptr.vmem [resolvable:$true] %s82_s12 }
  0x25   :  { %v45_v4 = vstv %s44_s4  ;;  %v48_v5 = vstv %s95_s5  ;;  %s139_s13 = scalar_lea.vmem %s83_s12, 64  ;;  %p144_p12 = scmp.lt.s32.totalorder %s83_s12, %s83_s12 }
  0x26   :  { %v46_v6 = vmul.f32 %v45_v4, %v37_v0  ;;  %v49_v7 = vmul.f32 %v48_v5, %v39_v1  ;;  %v52_v8 = vstv %s96_s6  ;;  %v56_v9 = vstv %s97_s7  ;;  %p140_p11 = scmp.ne.s32.totalorder %s83_s12, %s139_s13  ;;  %p145_p13 = scmp.lt.s32.totalorder %s139_s13, %s139_s13 }
  0x27   :  { %v53_v10 = vmul.f32 %v52_v8, %v41_v2  ;;  %v57_v11 = vmul.f32 %v56_v9, %v43_v3  ;;  %v61_v12 = vstv %s98_s8  ;;  %v64_v13 = vstv %s99_s9 }
  0x28   :  { %v50_v14 = vadd.f32 %v49_v7, %v46_v6  ;;  %v62_v15 = vmul.f32 %v61_v12, %v37_v0  ;;  %v65_v16 = vmul.f32 %v64_v13, %v39_v1  ;;  %v68_v17 = vstv %s100_s10  ;;  %p146_p0 = por %p145_p13, %p144_p12 }
  0x29   :  { %v69_v18 = vmul.f32 %v68_v17, %v41_v2  ;;  %v72_v19 = vstv %s101_s11 }
  0x2a   :  { %v54_v20 = vadd.f32 %v53_v10, %v50_v14  ;;  %v66_v21 = vadd.f32 %v65_v16, %v62_v15  ;;  %v73_v22 = vmul.f32 %v72_v19, %v43_v3  ;;  %p147_p1 = pnand %p146_p0, %p140_p11 }
  0x2c   :  { %v58_v23 = vadd.f32 %v57_v11, %v54_v20  ;;  %v70_v24 = vadd.f32 %v69_v18, %v66_v21 }
  0x2e   :  { %59 = vst [vmem:[#allocation7] sm:$0x3] %v58_v23  ;;  %v74_v25 = vadd.f32 %v73_v22, %v70_v24 }
  0x30   :  { %76 = vst [vmem:[#allocation7 + $0x2] sm:$0x3] %v74_v25 }
  0x31   :  { %150 = shalt.err (!%p147_p1)
}
  0x32   :  { %s151_s16 = scalar_lea.hbm %s231_s2, 64 }
  0x33   :  { %p152_p2 = scmp.ne.s32.totalorder %s231_s2, %s151_s16  ;;  %p155_p3 = scmp.lt.u32.totalorder %s151_s16, %s231_s2 }
  0x35   :  { %p157_p4 = pnand %p155_p3, %p152_p2 }
  0x37   :  { %160 = shalt.err (!%p157_p4)
}
  0x38   :  { %88 = dma.vmem_to_hbm [thread:$0]  %s83_s12, 64, %s231_s2, [#allocation4], %s169_s0, %s169_s0, %s170_s29  }
  0x39   :  { %165 = dma.done.wait [#allocation4], 64  }
  0x3a   :  { %166 = vsyncadd [#allocation4], 4294967232 }
  0x3b   :  { %92 = vsyncpa [#allocation3], 1 }
  0x3c   :  { %93 = vsyncpa [#allocation4], 1 }
  0x3d   :  { %94 = vsyncpa [#allocation5], 1 }

</bundles_post_ra>
